<compile_context>
chip_gen: v5e
topology: v5e:2x2
jax: 0.10.0
libtpu: 0.0.40
codegen_flags: <defaults>
</compile_context>

<pallas_src>
import functools

import jax
import jax.numpy as jnp
from jax.experimental import pallas as pl
from jax.experimental.pallas import tpu as pltpu

_MAX_TILE_N = 4096


def _round_up(x, m):
    return ((x + m - 1) // m) * m


def _device_kind():
    try:
        return (jax.devices()[0].device_kind or "").lower()
    except Exception:
        return ""


def _is_v7x(kind):
    return ("v7" in kind) or ("tpu7" in kind) or ("tpu 7" in kind)


def _is_bf16_native(kind):
    # v6e / v7x VPUs are bf16-native; v5e (and unknown chips) take the safe
    # early-upcast path.
    return ("v6" in kind) or _is_v7x(kind)


def _vmem_capacity_bytes(kind):
    try:
        cap = int(pltpu.get_tpu_info().vmem_capacity_bytes)
        if cap > 0:
            return cap
    except Exception:
        pass
    return (64 << 20) if _is_v7x(kind) else (128 << 20)


def _choose_tile_n(n, c, itemsize, sublane, vmem_cap, is_v7x):
    """Pick tile_n so double-buffered prob + aux tiles fit the chip's VMEM."""
    c_pad = _round_up(c, 128)
    # Per-block prob target (review: 8-16 MiB; <=12 MiB on v7x's 64 MiB VMEM).
    prob_block_cap = (12 << 20) if is_v7x else (16 << 20)
    # Total budget for all double-buffered streaming tiles.
    stream_budget = min(int(vmem_cap * 0.55), 44 << 20)
    # Bytes per logical row: 2x-buffered prob + 2 lane-padded aux inputs (x2).
    per_row = 2 * c_pad * itemsize + 2 * 2 * 128 * 4
    tn = min(prob_block_cap // max(1, c_pad * itemsize),
             stream_budget // per_row,
             _MAX_TILE_N)
    tn = min(tn, _round_up(n, sublane))
    return max(sublane, (tn // sublane) * sublane)


def _ganloss_kernel(prob_ref, target_ref, reward_ref, out_ref, *,
                    n_rows, tile_n, tiles_per_core, upcast_early):
    core = pl.program_id(0)
    step = pl.program_id(1)

    @pl.when(step == 0)
    def _init():
        out_ref[...] = jnp.zeros_like(out_ref)

    prob = prob_ref[...]                                 # (tile_n, C)
    if upcast_early:                                     # static: v5e / unknown
        prob = prob.astype(jnp.float32)
    target = target_ref[...]                             # (tile_n, 1) i32
    reward = reward_ref[...]                             # (tile_n, 1) f32

    # prob[i, target[i]] via compare + select (single vsel; MXU stays idle).
    col_ids = jax.lax.broadcasted_iota(jnp.int32, prob.shape, dimension=1)
    selected = jnp.where(col_ids == target, prob, jnp.zeros_like(prob))

    # Lane (C) reduce first; exact even in bf16 (<= 1 nonzero per row), so the
    # f32 upcast touches tile_n elements instead of tile_n*C.
    row = jnp.sum(selected, axis=-1, keepdims=True).astype(jnp.float32)

    # Mask rows past the true N (ragged last tile / clamped duplicate tile).
    global_tile = core * tiles_per_core + step
    row_ids = global_tile * tile_n + jax.lax.broadcasted_iota(
        jnp.int32, row.shape, dimension=0)
    contrib = jnp.where(row_ids < n_rows, row * reward, 0.0)

    # Per-step scalar partial, broadcast-added into the resident output block
    # (one vreg): no (tile_n, 1) accumulator, no per-step tile-sized stores.
    out_ref[...] = out_ref[...] + jnp.sum(contrib)


def gan_loss(prob, target, reward, *, tile_n=None):
    """prob: (N, C) f32/bf16, target: (N,) int, reward: (N,) -> scalar f32."""
    N, C = prob.shape

    # Keep prob in its native (narrow) dtype; only fix up unexpected dtypes.
    if prob.dtype not in (jnp.dtype(jnp.float32), jnp.dtype(jnp.bfloat16)):
        prob = prob.astype(jnp.float32)
    target2d = target.astype(jnp.int32).reshape(N, 1)
    reward2d = reward.astype(jnp.float32).reshape(N, 1)

    kind = _device_kind()
    is_v7x = _is_v7x(kind)
    vmem_cap = _vmem_capacity_bytes(kind)
    itemsize = jnp.dtype(prob.dtype).itemsize
    sublane = 16 if prob.dtype == jnp.dtype(jnp.bfloat16) else 8
    upcast_early = not _is_bf16_native(kind)

    if tile_n is None:
        tile_n = _choose_tile_n(N, C, itemsize, sublane, vmem_cap, is_v7x)
    tile_n = max(sublane,
                 (min(tile_n, _round_up(N, sublane), _MAX_TILE_N)
                  // sublane) * sublane)

    num_tiles = int(pl.cdiv(N, tile_n))
    num_cores = 2 if (is_v7x and num_tiles >= 2) else 1
    tiles_per_core = int(pl.cdiv(num_tiles, num_cores))
    grid = (num_cores, tiles_per_core)

    # Row-block index map shared by prob/target/reward.  Only clamp when the
    # per-core split can address one tile past the end (odd tile count on
    # v7x); the kernel's row-validity mask zeroes that duplicate tile anyway.
    if num_cores * tiles_per_core == num_tiles:
        def _row_block(p, i):
            return (p * tiles_per_core + i, 0)
    else:
        def _row_block(p, i):
            return (jnp.minimum(p * tiles_per_core + i, num_tiles - 1), 0)

    # VMEM: double-buffered prob blocks + two lane-padded (tile_n, 1) aux
    # blocks (x2 buffers) + slack; capped by the chip's physical capacity.
    prob_block = tile_n * _round_up(C, 128) * itemsize
    aux_block = tile_n * 128 * 4
    usage = 2 * prob_block + 2 * 2 * aux_block + (8 << 20)
    vmem_limit = int(min(max(usage, 32 << 20), int(vmem_cap * 0.9)))

    out = pl.pallas_call(
        functools.partial(_ganloss_kernel, n_rows=N, tile_n=tile_n,
                          tiles_per_core=tiles_per_core,
                          upcast_early=upcast_early),
        # One (8, 128) f32 output block per core (native tile; block [0, 0]
        # holds the partial, the rest stays zero).
        out_shape=jax.ShapeDtypeStruct((num_cores * 8, 128), jnp.float32),
        grid_spec=pltpu.PrefetchScalarGridSpec(
            num_scalar_prefetch=0,
            grid=grid,
            in_specs=[
                pl.BlockSpec((tile_n, C), _row_block),
                pl.BlockSpec((tile_n, 1), _row_block),
                pl.BlockSpec((tile_n, 1), _row_block),
            ],
            out_specs=pl.BlockSpec((8, 128), lambda p, i: (p, 0)),
        ),
        compiler_params=pltpu.CompilerParams(
            dimension_semantics=("parallel", "arbitrary"),
            vmem_limit_bytes=vmem_limit,
        ),
    )(prob, target2d, reward2d)

    # Every element of core p's block holds that core's (positive) partial sum.
    partials = out.reshape(num_cores, 8, 128)[:, 0, 0]
    return -jnp.sum(partials)


if __name__ == "__main__":
    key = jax.random.PRNGKey(0)
    k1, k2, k3 = jax.random.split(key, 3)

    # Small smoke test consistent with the module: (N, C) log-probs, (N,) target/reward.
    N, C = 8, 32
    logits = jax.random.normal(k1, (N, C), dtype=jnp.float32)
    prob = jax.nn.log_softmax(logits, axis=-1)
    target = jax.random.randint(k2, (N,), 0, C, dtype=jnp.int32)
    reward = jax.random.uniform(k3, (N,), dtype=jnp.float32)

    loss = gan_loss(prob, target, reward)
    jax.block_until_ready(loss)
    ref = -jnp.sum(prob[jnp.arange(N), target] * reward)
    assert jnp.allclose(loss, ref, atol=1e-5, rtol=1e-5), (loss, ref)

    # Multi-tile path (grid > 1, ragged last tile): streaming + masking + scalar acc.
    N2, C2 = 300, 512
    k4, k5, k6 = jax.random.split(k3, 3)
    logits2 = jax.random.normal(k4, (N2, C2), dtype=jnp.float32)
    prob2 = jax.nn.log_softmax(logits2, axis=-1)
    target2 = jax.random.randint(k5, (N2,), 0, C2, dtype=jnp.int32)
    reward2 = jax.random.uniform(k6, (N2,), dtype=jnp.float32)

    loss2 = gan_loss(prob2, target2, reward2, tile_n=128)
    jax.block_until_ready(loss2)
    ref2 = -jnp.sum(prob2[jnp.arange(N2), target2] * reward2)
    assert jnp.allclose(loss2, ref2, atol=1e-4, rtol=1e-5), (loss2, ref2)

    # bf16 prob path (bf16 select/reduce on v6e/v7x, early f32 upcast on v5e).
    N3, C3 = 64, 256
    k7, k8, k9 = jax.random.split(k6, 3)
    logits3 = jax.random.normal(k7, (N3, C3), dtype=jnp.float32)
    prob3 = jax.nn.log_softmax(logits3, axis=-1).astype(jnp.bfloat16)
    target3 = jax.random.randint(k8, (N3,), 0, C3, dtype=jnp.int32)
    reward3 = jax.random.uniform(k9, (N3,), dtype=jnp.float32)

    loss3 = gan_loss(prob3, target3, reward3)
    jax.block_until_ready(loss3)
    ref3 = -jnp.sum(prob3.astype(jnp.float32)[jnp.arange(N3), target3] * reward3)
    assert jnp.allclose(loss3, ref3, atol=1e-2, rtol=1e-3), (loss3, ref3)

    print("KERNEL_OK")
</pallas_src>

<mosaic_0001>
module attributes {stable_mosaic.version = 11 : i64} {
  func.func @_ganloss_kernel(%arg0: i32, %arg1: i32, %arg2: memref<8x32xf32, #tpu.memory_space<vmem>>, %arg3: memref<8x1xi32, #tpu.memory_space<vmem>>, %arg4: memref<8x1xf32, #tpu.memory_space<vmem>>, %arg5: memref<8x128xf32, #tpu.memory_space<vmem>>) attributes {dimension_semantics = [#tpu.dimension_semantics<parallel>, #tpu.dimension_semantics<arbitrary>], iteration_bounds = array<i64: 1, 1>, scalar_prefetch = 0 : i64, scratch_operands = 0 : i64, tpu.core_type = #tpu.core_type<tc>, window_params = [{transform_indices = @transform_0, window_bounds = array<i64: 8, 32>}, {transform_indices = @transform_1, window_bounds = array<i64: 8, 1>}, {transform_indices = @transform_2, window_bounds = array<i64: 8, 1>}, {transform_indices = @transform_3, window_bounds = array<i64: 8, 128>}]} {
    %c0_i32 = arith.constant 0 : i32
    %0 = arith.cmpi eq, %arg1, %c0_i32 : i32
    %1 = arith.extui %0 : i1 to i32
    %c0_i32_0 = arith.constant 0 : i32
    %2 = arith.cmpi ne, %1, %c0_i32_0 : i32
    scf.if %2 {
      %cst_14 = arith.constant 0.000000e+00 : f32
      %32 = vector.broadcast %cst_14 : f32 to vector<8x128xf32>
      %c0_15 = arith.constant 0 : index
      %c0_16 = arith.constant 0 : index
      %33 = vector.load %arg5[%c0_15, %c0_16] : memref<8x128xf32, #tpu.memory_space<vmem>>, vector<8x128xf32>
      tpu.vector_store %arg5[%c0_15, %c0_16], %32 {strides = array<i32>} : memref<8x128xf32, #tpu.memory_space<vmem>>, vector<8x128xf32>,
    } else {
    }
    %c0 = arith.constant 0 : index
    %c0_1 = arith.constant 0 : index
    %3 = vector.load %arg2[%c0, %c0_1] : memref<8x32xf32, #tpu.memory_space<vmem>>, vector<8x32xf32>
    %c0_2 = arith.constant 0 : index
    %c0_3 = arith.constant 0 : index
    %4 = vector.load %arg3[%c0_2, %c0_3] : memref<8x1xi32, #tpu.memory_space<vmem>>, vector<8x1xi32>
    %c0_4 = arith.constant 0 : index
    %c0_5 = arith.constant 0 : index
    %5 = vector.load %arg4[%c0_4, %c0_5] : memref<8x1xf32, #tpu.memory_space<vmem>>, vector<8x1xf32>
    %6 = tpu.iota {dimensions = array<i32: 1>} : vector<8x32xi32>
    %7 = vector.broadcast %4 : vector<8x1xi32> to vector<8x32xi32>
    %8 = arith.cmpi eq, %6, %7 : vector<8x32xi32>
    %cst = arith.constant 0.000000e+00 : f32
    %9 = vector.broadcast %cst : f32 to vector<8x32xf32>
    %10 = arith.select %8, %3, %9 : vector<8x32xi1>, vector<8x32xf32>
    %cst_6 = arith.constant dense<0.000000e+00> : vector<8xf32>
    %11 = vector.multi_reduction <add>, %10, %cst_6 [1] : vector<8x32xf32> to vector<8xf32>
    %12 = vector.shape_cast %11 : vector<8xf32> to vector<8x1xf32>
    %c1_i32 = arith.constant 1 : i32
    %13 = arith.muli %arg0, %c1_i32 : i32
    %14 = arith.addi %13, %arg1 : i32
    %c8_i32 = arith.constant 8 : i32
    %15 = arith.muli %14, %c8_i32 : i32
    %16 = tpu.iota {dimensions = array<i32: 0>} : vector<8x1xi32>
    %17 = vector.broadcast %15 : i32 to vector<8x1xi32>
    %18 = arith.addi %17, %16 : vector<8x1xi32>
    %c8_i32_7 = arith.constant 8 : i32
    %19 = vector.broadcast %c8_i32_7 : i32 to vector<8x1xi32>
    %20 = arith.cmpi slt, %18, %19 : vector<8x1xi32>
    %21 = arith.mulf %12, %5 : vector<8x1xf32>
    %cst_8 = arith.constant 0.000000e+00 : f32
    %22 = vector.broadcast %cst_8 : f32 to vector<8x1xf32>
    %23 = arith.select %20, %21, %22 : vector<8x1xi1>, vector<8x1xf32>
    %c0_9 = arith.constant 0 : index
    %c0_10 = arith.constant 0 : index
    %24 = vector.load %arg5[%c0_9, %c0_10] : memref<8x128xf32, #tpu.memory_space<vmem>>, vector<8x128xf32>
    %25 = vector.shape_cast %23 : vector<8x1xf32> to vector<1x8x1xf32>
    %cst_11 = arith.constant dense<0.000000e+00> : vector<1xf32>
    %26 = vector.multi_reduction <add>, %25, %cst_11 [1, 2] : vector<1x8x1xf32> to vector<1xf32>
    %27 = vector.shape_cast %26 : vector<1xf32> to vector<1x1x1xf32>
    %28 = vector.extract %27[0, 0, 0] : f32 from vector<1x1x1xf32>
    %29 = vector.broadcast %28 : f32 to vector<8x128xf32>
    %30 = arith.addf %24, %29 : vector<8x128xf32>
    %c0_12 = arith.constant 0 : index
    %c0_13 = arith.constant 0 : index
    %31 = vector.load %arg5[%c0_12, %c0_13] : memref<8x128xf32, #tpu.memory_space<vmem>>, vector<8x128xf32>
    tpu.vector_store %arg5[%c0_12, %c0_13], %30 {strides = array<i32>} : memref<8x128xf32, #tpu.memory_space<vmem>>, vector<8x128xf32>,
    return
  }
  func.func @transform_0(%arg0: i32, %arg1: i32) -> (i32, i32) {
    %c1_i32 = arith.constant 1 : i32
    %0 = arith.muli %arg0, %c1_i32 : i32
    %1 = arith.addi %0, %arg1 : i32
    %c0_i32 = arith.constant 0 : i32
    %c0_i32_0 = arith.constant 0 : i32
    return %1, %c0_i32 : i32, i32
  }
  func.func @transform_1(%arg0: i32, %arg1: i32) -> (i32, i32) {
    %c1_i32 = arith.constant 1 : i32
    %0 = arith.muli %arg0, %c1_i32 : i32
    %1 = arith.addi %0, %arg1 : i32
    %c0_i32 = arith.constant 0 : i32
    %c0_i32_0 = arith.constant 0 : i32
    return %1, %c0_i32 : i32, i32
  }
  func.func @transform_2(%arg0: i32, %arg1: i32) -> (i32, i32) {
    %c1_i32 = arith.constant 1 : i32
    %0 = arith.muli %arg0, %c1_i32 : i32
    %1 = arith.addi %0, %arg1 : i32
    %c0_i32 = arith.constant 0 : i32
    %c0_i32_0 = arith.constant 0 : i32
    return %1, %c0_i32 : i32, i32
  }
  func.func @transform_3(%arg0: i32, %arg1: i32) -> (i32, i32) {
    %c0_i32 = arith.constant 0 : i32
    %c0_i32_0 = arith.constant 0 : i32
    return %arg0, %c0_i32 : i32, i32
  }
}

</mosaic_0001>

<bundles_post_ra>
// kernel: tpu_custom_call.1
= control target key start
LH: loop header
LB: loop body
LE: loop exit
PB: predicated region body
PF: predicated region fallthrough
CT: control target
= control target key end

     0   :  { %s209_s0 = inlined_call_operand.vmem [shape: f32[8,32], index: 0, kind: input, shape index: {}]   ;;  %s210_s1 = inlined_call_operand.vmem [shape: s32[8,1], index: 1, kind: input, shape index: {}]   ;;  %s211_s2 = inlined_call_operand.vmem [shape: f32[8,1], index: 2, kind: input, shape index: {}]   ;;  %s212_s3 = inlined_call_operand.hbm [shape: f32[8,128], index: 3, kind: output, shape index: {}]  }
   0x1   :  { %v72_v0 = vld [vmem:[%s210_s1] sm:$0xff] }
   0x2   :  { %8 = vsyncpa [#allocation3], 0  ;;  %v175_v1 = vmov 0   ;;  %v74_v2 = vlaneseq  ;;  %v71_v4 = vld [vmem:[%s209_s0] sm:$0xff]  ;;  %vm81_vm0 = vcmask 261120   ;;  %vm95_vm2 = vcmask 7168  }
   0x3   :  { %148 = vset.pattern.permute.xlu0 %v175_v1  ;;  %v73_v8 = vld [vmem:[%s211_s2] sm:$0xff]  ;;  %s176_s0 = smov [#allocation2]   ;;  %s116_s20 = sshll.u32 %s212_s3, 4  ;;  %s117_s20 = int_to_ptr.hbm [resolvable:$true] %s116_s20 }
   0x4   :  { %77 = vperm.xlu0 %148, %v72_v0   ;;  %v75_v3 = vand.u32 127, %v74_v2  ;;  %s114_s1 = sshll.u32 %s176_s0, 4  ;;  %s115_s1 = int_to_ptr.vmem [resolvable:$true] %s114_s1 }
  0x76   :  { %v78_v5 = vpop.permute.xlu0 %77 }
  0x77   :  { %vm79_vm1 = vcmp.eq.s32.totalorder %v75_v3, %v78_v5 }
  0x78   :  { %v80_v6 = vsel %vm79_vm1, %v71_v4, 0.0 }
  0x79   :  { %v82_v7 = vsel %vm81_vm0, %v80_v6, 0.0 }
  0x7a   :  { %83 = vadd.xlane.f32.xlu0 %v82_v7 }
  0xed   :  { %v84_v9 = vpop.xlane.xlu0 %83 }
  0xee   :  { %v92_v10 = vmul.f32 %v84_v9, %v73_v8 }
  0xf0   :  { %v96_v11 = vsel %vm95_vm2, %v92_v10, 0.0 }
  0xf1   :  { %97 = vadd.xlane.f32.xlu1 %v96_v11 }
 0x164   :  { %v98_v12 = vpop.xlane.xlu1 %97 }
 0x165   :  { %v99_v13 = vrot.slane %v98_v12, 4 }
 0x167   :  { %v100_v14 = vadd.f32 %v99_v13, %v98_v12 }
 0x169   :  { %v101_v15 = vrot.slane %v100_v14, 2 }
 0x16b   :  { %v102_v16 = vadd.f32 %v101_v15, %v100_v14 }
 0x16d   :  { %v103_v17 = vrot.slane %v102_v16, 1 }
 0x16f   :  { %v104_v18 = vadd.f32 %v103_v17, %v102_v16 }
 0x171   :  { %143 = vpush %v104_v18 }
 0x1a2   :  { %s144_s2 = spop %143 }
 0x1a3   :  { %v106_v19 = vstv %s144_s2 }
 0x1a4   :  { %108 = vst [vmem:[#allocation2] sm:$0xff] %v106_v19 }
 0x1a5   :  { %119 = dma.vmem_to_hbm [thread:$0]  %s115_s1, 128, %s117_s20, [#allocation3]  }
 0x1a6   :  { %173 = dma.done.wait [#allocation3], 128  }
 0x1a7   :  { %174 = vsyncadd [#allocation3], 4294967168 }
 0x1a8   :  { %124 = vsyncpa [#allocation3], 1 }

</bundles_post_ra>
